<compile_context>
chip_gen: v6e
topology: v6e:2x2x1
jax: 0.10.0
libtpu: 0.0.40
codegen_flags: <defaults>
</compile_context>

<pallas_src>
import functools

import jax
import jax.numpy as jnp
from jax import lax
from jax.experimental import pallas as pl
from jax.experimental.pallas import tpu as pltpu

_LANE = 128      # vreg lane width
_SUBLANE = 8     # f32 sublane count


def _round_up(x, m):
    return (x + m - 1) // m * m


# ----------------------------- Pallas kernel -------------------------------

def _mlp_fused_kernel(x_ref, w1_ref, b1_ref, w2_ref, b2_ref, o_ref, *, dim_out):
    # x arrives as bf16 (half the HBM bytes of f32); weights are resident bf16.
    x = x_ref[...]

    # fc1 on the MXU: (tm, K) @ (K, H_pad), f32 accumulation. Padded hidden
    # columns have zero weights and zero bias, so they stay exactly zero.
    h = jnp.dot(x, w1_ref[...], preferred_element_type=jnp.float32)
    h = h + b1_ref[...]

    # dropout (eval mode) == identity, then ReLU on the VPU.
    h = jnp.maximum(h, 0.0)

    # fc2 on the MXU: (tm, H_pad) @ (H_pad, N_pad), f32 accumulation.
    logits = jnp.dot(h.astype(jnp.bfloat16), w2_ref[...],
                     preferred_element_type=jnp.float32)
    logits = logits + b2_ref[...]

    # Mask the lane-padding columns (col >= dim_out) to -inf so they contribute
    # exp(-inf) == 0 to the softmax denominator (and 0 to the stored probs).
    col = lax.broadcasted_iota(jnp.int32, logits.shape, 1)
    logits = jnp.where(col < dim_out, logits, -jnp.inf)

    # Numerically stable softmax(dim=1); the divide goes to the idle EUP slot.
    m = jnp.max(logits, axis=-1, keepdims=True)
    e = jnp.exp(logits - m)
    s = jnp.sum(e, axis=-1, keepdims=True)
    o_ref[...] = (e * pl.reciprocal(s, approx=True)).astype(o_ref.dtype)


def mlp_pallas(x_flat, w1, b1, w2, b2, *, dim_out):
    """x_flat: (B, dim_in) bf16; w1: (dim_in, H_pad) bf16; b1: (1, H_pad) f32;
    w2: (H_pad, N_pad) bf16; b2: (1, N_pad) f32. Returns (B, dim_out) f32."""
    B, dim_in = x_flat.shape
    h_pad = w1.shape[1]
    n_pad = w2.shape[1]

    # Row tile: large (this kernel is HBM-bound on x; 512-1024 row tiles reach
    # ~85%+ of HBM roofline), multiple of 8 sublanes, and sized so the grid has
    # at least 2 parallel steps so v7x can shard rows across both TensorCores.
    tm = min(1024, _round_up(pl.cdiv(B, 2), _SUBLANE))
    n_steps = max(2, pl.cdiv(B, tm))
    b_pad = tm * n_steps
    if b_pad != B:
        x_flat = jnp.pad(x_flat, ((0, b_pad - B), (0, 0)))

    kernel = functools.partial(_mlp_fused_kernel, dim_out=dim_out)
    out = pl.pallas_call(
        kernel,
        out_shape=jax.ShapeDtypeStruct((b_pad, n_pad), jnp.float32),
        grid=(n_steps,),
        in_specs=[
            pl.BlockSpec((tm, dim_in), lambda i: (i, 0)),     # x row tile
            # Grid-invariant weights/biases (constant index_map) stay resident
            # in VMEM; < 0.6 MiB total after lane padding.
            pl.BlockSpec((dim_in, h_pad), lambda i: (0, 0)),  # w1
            pl.BlockSpec((1, h_pad), lambda i: (0, 0)),       # b1
            pl.BlockSpec((h_pad, n_pad), lambda i: (0, 0)),   # w2
            pl.BlockSpec((1, n_pad), lambda i: (0, 0)),       # b2
        ],
        out_specs=pl.BlockSpec((tm, n_pad), lambda i: (i, 0)),
        compiler_params=pltpu.CompilerParams(
            dimension_semantics=("parallel",),
            # tm up to 1024: x tile (bf16) 2 MiB x 2 bufs + out 0.5 MiB x 2 +
            # weights < 1.5 MiB -> 32 MiB is ample and legal on v5e/v6e/v7x
            # (covers v5e's 16 MiB scoped default).
            vmem_limit_bytes=32 * 1024 * 1024,
            # Allow XLA to fuse the flatten/bf16-cast/pad producer chain into
            # the pallas_call x input instead of a separate HBM round trip.
            allow_input_fusion=[True, False, False, False, False],
        ),
    )(x_flat, w1, b1, w2, b2)
    return out[:B, :dim_out]


# --------------------------------- model -----------------------------------

def init_params(key, dim_in, dim_hidden, dim_out):
    """PyTorch nn.Linear-style init. Weights are pre-transposed to (in, out),
    zero-padded once to lane-dense (multiple-of-128) hidden/output dims
    (exactly correctness-preserving: zero hidden columns give ReLU(0)=0 which
    contributes 0 to fc2; padded output logits are masked to -inf in-kernel),
    and pre-cast to bf16 once (no per-forward transpose/cast/pad of weights)."""
    ks = jax.random.split(key, 4)

    def u(k, shape, fan_in):
        bound = 1.0 / jnp.sqrt(fan_in)
        return jax.random.uniform(k, shape, jnp.float32, -bound, bound)

    h_pad = _round_up(dim_hidden, _LANE)
    n_pad = _round_up(dim_out, _LANE)

    w1 = u(ks[0], (dim_in, dim_hidden), dim_in)       # already (in, out)
    b1 = u(ks[1], (1, dim_hidden), dim_in)
    w2 = u(ks[2], (dim_hidden, dim_out), dim_hidden)
    b2 = u(ks[3], (1, dim_out), dim_hidden)

    w1 = jnp.pad(w1, ((0, 0), (0, h_pad - dim_hidden)))
    b1 = jnp.pad(b1, ((0, 0), (0, h_pad - dim_hidden)))
    w2 = jnp.pad(w2, ((0, h_pad - dim_hidden), (0, n_pad - dim_out)))
    b2 = jnp.pad(b2, ((0, 0), (0, n_pad - dim_out)))

    return {
        "w1": w1.astype(jnp.bfloat16),
        "b1": b1,
        "w2": w2.astype(jnp.bfloat16),
        "b2": b2,
    }


@functools.partial(jax.jit, static_argnames=("dim_out",))
def mlp_forward(params, x, *, dim_out):
    """Matches MLP.forward: flatten(C*H*W) -> fc1 -> dropout(eval) -> relu
    -> fc2 -> softmax(dim=1)."""
    dim_in = x.shape[1] * x.shape[-2] * x.shape[-1]
    # Flatten and downcast to bf16 here (upstream of the kernel) so the kernel
    # DMAs half the x bytes; allow_input_fusion fuses this into the pallas_call.
    x_flat = x.reshape(-1, dim_in).astype(jnp.bfloat16)
    return mlp_pallas(x_flat, params["w1"], params["b1"],
                      params["w2"], params["b2"], dim_out=dim_out)


if __name__ == "__main__":
    key = jax.random.PRNGKey(0)
    pkey, xkey = jax.random.split(key)

    # Small shapes consistent with the module: x (B=2, C=4, 16, 16)
    # -> dim_in = 4*16*16 = 1024, dim_hidden = 32, dim_out = 10.
    B, C, Himg, Wimg = 2, 4, 16, 16
    dim_in, dim_hidden, dim_out = C * Himg * Wimg, 32, 10

    params = init_params(pkey, dim_in, dim_hidden, dim_out)
    x = jax.random.normal(xkey, (B, C, Himg, Wimg), dtype=jnp.float32)

    probs = mlp_forward(params, x, dim_out=dim_out)
    jax.block_until_ready(probs)

    assert probs.shape == (B, dim_out)
    # softmax rows must be non-negative and sum to ~1 (bf16 operands +
    # approx-reciprocal normalization -> loose tolerance).
    assert bool(jnp.all(probs >= 0.0))
    assert bool(jnp.all(jnp.abs(jnp.sum(probs, axis=1) - 1.0) < 2e-2))

    # Pure-JAX f32 reference using the same (bf16-stored) weights.
    xf = x.reshape(B, dim_in).astype(jnp.float32)
    h_ref = jnp.maximum(xf @ params["w1"].astype(jnp.float32) + params["b1"], 0.0)
    logits_ref = h_ref @ params["w2"].astype(jnp.float32) + params["b2"]
    ref = jax.nn.softmax(logits_ref[:, :dim_out], axis=1)
    assert bool(jnp.max(jnp.abs(probs - ref)) < 3e-2)

    print("KERNEL_OK")
</pallas_src>

<mosaic_0001>
module attributes {stable_mosaic.version = 11 : i64} {
  func.func @_mlp_fused_kernel(%arg0: i32, %arg1: memref<8x1024xbf16, #tpu.memory_space<vmem>>, %arg2: memref<1024x128xbf16, #tpu.memory_space<vmem>>, %arg3: memref<1x128xf32, #tpu.memory_space<vmem>>, %arg4: memref<128x128xbf16, #tpu.memory_space<vmem>>, %arg5: memref<1x128xf32, #tpu.memory_space<vmem>>, %arg6: memref<8x128xf32, #tpu.memory_space<vmem>>) attributes {dimension_semantics = [#tpu.dimension_semantics<parallel>], iteration_bounds = array<i64: 2>, scalar_prefetch = 0 : i64, scratch_operands = 0 : i64, tpu.core_type = #tpu.core_type<tc>, window_params = [{transform_indices = @transform_0, window_bounds = array<i64: 8, 1024>}, {pipeline_mode = #tpu.pipeline_mode<synchronous>, transform_indices = @transform_1, window_bounds = array<i64: 1024, 128>}, {pipeline_mode = #tpu.pipeline_mode<synchronous>, transform_indices = @transform_2, window_bounds = array<i64: 1, 128>}, {pipeline_mode = #tpu.pipeline_mode<synchronous>, transform_indices = @transform_3, window_bounds = array<i64: 128, 128>}, {pipeline_mode = #tpu.pipeline_mode<synchronous>, transform_indices = @transform_4, window_bounds = array<i64: 1, 128>}, {transform_indices = @transform_5, window_bounds = array<i64: 8, 128>}]} {
    %c0 = arith.constant 0 : index
    %c0_0 = arith.constant 0 : index
    %0 = vector.load %arg1[%c0, %c0_0] : memref<8x1024xbf16, #tpu.memory_space<vmem>>, vector<8x1024xbf16>
    %c0_1 = arith.constant 0 : index
    %c0_2 = arith.constant 0 : index
    %1 = vector.load %arg2[%c0_1, %c0_2] : memref<1024x128xbf16, #tpu.memory_space<vmem>>, vector<1024x128xbf16>
    %cst = arith.constant dense<0.000000e+00> : vector<8x128xf32>
    %2 = tpu.matmul %0, %1, %cst {dimension_numbers = #tpu.dot_dimension_numbers<[1], [0], [0], [1], [0, 0, 1, 1], [], []>} : vector<8x1024xbf16>, vector<1024x128xbf16>, vector<8x128xf32> -> vector<8x128xf32>
    %c0_3 = arith.constant 0 : index
    %c0_4 = arith.constant 0 : index
    %3 = vector.load %arg3[%c0_3, %c0_4] : memref<1x128xf32, #tpu.memory_space<vmem>>, vector<1x128xf32>
    %4 = vector.broadcast %3 : vector<1x128xf32> to vector<8x128xf32>
    %5 = arith.addf %2, %4 : vector<8x128xf32>
    %cst_5 = arith.constant 0.000000e+00 : f32
    %6 = vector.broadcast %cst_5 : f32 to vector<8x128xf32>
    %7 = arith.maximumf %5, %6 : vector<8x128xf32>
    %8 = arith.truncf %7 : vector<8x128xf32> to vector<8x128xbf16>
    %c0_6 = arith.constant 0 : index
    %c0_7 = arith.constant 0 : index
    %9 = vector.load %arg4[%c0_6, %c0_7] : memref<128x128xbf16, #tpu.memory_space<vmem>>, vector<128x128xbf16>
    %cst_8 = arith.constant dense<0.000000e+00> : vector<8x128xf32>
    %10 = tpu.matmul %8, %9, %cst_8 {dimension_numbers = #tpu.dot_dimension_numbers<[1], [0], [0], [1], [0, 0, 1, 1], [], []>} : vector<8x128xbf16>, vector<128x128xbf16>, vector<8x128xf32> -> vector<8x128xf32>
    %c0_9 = arith.constant 0 : index
    %c0_10 = arith.constant 0 : index
    %11 = vector.load %arg5[%c0_9, %c0_10] : memref<1x128xf32, #tpu.memory_space<vmem>>, vector<1x128xf32>
    %12 = vector.broadcast %11 : vector<1x128xf32> to vector<8x128xf32>
    %13 = arith.addf %10, %12 : vector<8x128xf32>
    %14 = tpu.iota {dimensions = array<i32: 1>} : vector<8x128xi32>
    %c10_i32 = arith.constant 10 : i32
    %15 = vector.broadcast %c10_i32 : i32 to vector<8x128xi32>
    %16 = arith.cmpi slt, %14, %15 : vector<8x128xi32>
    %cst_11 = arith.constant 0xFF800000 : f32
    %17 = vector.broadcast %cst_11 : f32 to vector<8x128xf32>
    %18 = arith.select %16, %13, %17 : vector<8x128xi1>, vector<8x128xf32>
    %cst_12 = arith.constant dense<0xFF800000> : vector<8xf32>
    %19 = vector.multi_reduction <maximumf>, %18, %cst_12 [1] : vector<8x128xf32> to vector<8xf32>
    %20 = vector.shape_cast %19 : vector<8xf32> to vector<8x1xf32>
    %21 = vector.broadcast %20 : vector<8x1xf32> to vector<8x128xf32>
    %22 = arith.subf %18, %21 : vector<8x128xf32>
    %23 = math.exp %22 : vector<8x128xf32>
    %cst_13 = arith.constant dense<0.000000e+00> : vector<8xf32>
    %24 = vector.multi_reduction <add>, %23, %cst_13 [1] : vector<8x128xf32> to vector<8xf32>
    %25 = vector.shape_cast %24 : vector<8xf32> to vector<8x1xf32>
    %26 = tpu.reciprocal %25 {approx = true} : vector<8x1xf32> -> vector<8x1xf32>
    %27 = vector.broadcast %26 : vector<8x1xf32> to vector<8x128xf32>
    %28 = arith.mulf %23, %27 : vector<8x128xf32>
    %c0_14 = arith.constant 0 : index
    %c0_15 = arith.constant 0 : index
    %29 = vector.load %arg6[%c0_14, %c0_15] : memref<8x128xf32, #tpu.memory_space<vmem>>, vector<8x128xf32>
    tpu.vector_store %arg6[%c0_14, %c0_15], %28 {strides = array<i32>} : memref<8x128xf32, #tpu.memory_space<vmem>>, vector<8x128xf32>,
    return
  }
  func.func @transform_0(%arg0: i32) -> (i32, i32) {
    %c0_i32 = arith.constant 0 : i32
    %c0_i32_0 = arith.constant 0 : i32
    return %arg0, %c0_i32 : i32, i32
  }
  func.func @transform_1(%arg0: i32) -> (i32, i32) {
    %c0_i32 = arith.constant 0 : i32
    %c0_i32_0 = arith.constant 0 : i32
    %c0_i32_1 = arith.constant 0 : i32
    return %c0_i32, %c0_i32_0 : i32, i32
  }
  func.func @transform_2(%arg0: i32) -> (i32, i32) {
    %c0_i32 = arith.constant 0 : i32
    %c0_i32_0 = arith.constant 0 : i32
    %c0_i32_1 = arith.constant 0 : i32
    return %c0_i32, %c0_i32_0 : i32, i32
  }
  func.func @transform_3(%arg0: i32) -> (i32, i32) {
    %c0_i32 = arith.constant 0 : i32
    %c0_i32_0 = arith.constant 0 : i32
    %c0_i32_1 = arith.constant 0 : i32
    return %c0_i32, %c0_i32_0 : i32, i32
  }
  func.func @transform_4(%arg0: i32) -> (i32, i32) {
    %c0_i32 = arith.constant 0 : i32
    %c0_i32_0 = arith.constant 0 : i32
    %c0_i32_1 = arith.constant 0 : i32
    return %c0_i32, %c0_i32_0 : i32, i32
  }
  func.func @transform_5(%arg0: i32) -> (i32, i32) {
    %c0_i32 = arith.constant 0 : i32
    %c0_i32_0 = arith.constant 0 : i32
    return %arg0, %c0_i32 : i32, i32
  }
}

</mosaic_0001>

<bundles_post_ra>
// kernel: mlp_forward.2
= control target key start
LH: loop header
LB: loop body
LE: loop exit
PB: predicated region body
PF: predicated region fallthrough
CT: control target
= control target key end

     0   :  { %s1978_s0 = inlined_call_operand.hbm [shape: bf16[1024,128], index: 0, kind: input, shape index: {}]   ;;  %s1979_s1 = inlined_call_operand.vmem [shape: f32[1,128], index: 1, kind: input, shape index: {}]   ;;  %s1980_s2 = inlined_call_operand.vmem [shape: bf16[128,128], index: 2, kind: input, shape index: {}]   ;;  %s1981_s3 = inlined_call_operand.vmem [shape: f32[1,128], index: 3, kind: input, shape index: {}]   ;;  %s1982_s4 = inlined_call_operand.vmem [shape: bf16[2,1024], index: 4, kind: input, shape index: {}]   ;;  %s1983_s5 = inlined_call_operand.<no memory space> [shape: bf16[], index: 5, kind: input, shape index: {}]   ;;  %s1984_s6 = inlined_call_operand.vmem [shape: f32[16,128], index: 6, kind: output, shape index: {}]  }
   0x1   :  { %v11_v0 = vstv %s1983_s5 }
   0x2   :  { %v1797_v1 = vunpack.i.l.bf16 %v11_v0 }
   0x3   :  { %16 = vsyncpa [#allocation8], 0  ;;  %s1799_s23 = smov 0  }
   0x4 LB: > { %s1805_s24 = sadd.s32 4294967295, %s1752_s23   ;;  %p1386_p0 = scmp.ge.s32.totalorder %s1752_s23, 1  ;;  %s1752_s23 = sphi %s1799_s23, %s22_s23  }
   0x5   : > { %p163_p1 = scmp.lt.s32.totalorder %s1752_s23, 3  ;;  %s1754_s5 = smov [#allocation7]  }
   0x6   : > { %s175_s25 = sshll.u32 %s1754_s5, 4  ;;  %p1617_p3 = scmp.eq.s32.totalorder %s1805_s24, 0  ;;  %s176_s25 = int_to_ptr.vmem [resolvable:$true] %s175_s25 }
   0x7   : > { %p1809_p2 = pnand %p1386_p0, %p163_p1  ;;  %s1727_s27 = scalar_lea.vmem %s176_s25, 8192 }
   0x8   : > { %p1728_p7 = scmp.ne.s32.totalorder %s176_s25, %s1727_s27  ;;  %p1735_p10 = scmp.lt.s32.totalorder %s176_s25, %s176_s25 }
   0x9   : > { %p1613_p4 = pneg %p1809_p2  ;;  %p1736_p11 = scmp.lt.s32.totalorder %s1727_s27, %s1727_s27 }
   0xb   : > { %p1614_p5 = pnand %p1617_p3, %p1613_p4  ;;  %p1737_p12 = por %p1736_p11, %p1735_p10 }
   0xd   : > { %p1718_p6 = pneg %p1614_p5 }
   0xf   : > { %p1730_p8 = pnand %p1728_p7, %p1718_p6 }
  0x11   : > { %p1731_p9 = pneg %p1730_p8 }
  0x13   : > { %p1738_p13 = pnand %p1737_p12, %p1731_p9 }
  0x15   : > { %1741 = shalt.err (!%p1738_p13)
}
  0x16   : > { %s1755_s28 = smov 64   ;;  %s1756_s29 = smov 4  }
  0x17   : > { %1616 = dma.hbm_to_vmem [thread:$0]  (!%p1614_p5), %s1978_s0, 8192, %s176_s25, [#allocation8], %s1755_s28, %s1755_s28, %s1756_s29  }
  0x18   : > { %217 = sbr.rel (%p1809_p2) target bundleno = 808 (0x328), region = 40 }
  0x1d   : > { %1747 = dma.done.wait (%p1617_p3), [#allocation8], 8192  }
  0x1e   : > { %1749 = vsyncadd (%p1617_p3), [#allocation8], 4294959104  ;;  %s266_s8 = ssub.s32 0, %s1805_s24  ;;  %v1632_v2 = vld [vmem:[#allocation7 + $0x78] sm:$0xff]   ;;  %v1636_v6 = vld [vmem:[#allocation7 + $0x70] sm:$0xff]   ;;  %p253_p1 = scmp.lt.s32.totalorder %s1805_s24, 0  ;;  %v281_v24 = vlaneseq }
  0x1f   : > { %p1830_p0 = scmp.lt.s32.totalorder %s266_s8, 0  ;;  %v1633_v3 = vld [vmem:[#allocation7 + $0xf8] sm:$0xff]   ;;  %1492 = vmatprep.subr.bf16.mxu0 %v1632_v2  ;;  %v1637_v7 = vld [vmem:[#allocation7 + $0xf0] sm:$0xff]   ;;  %v1640_v10 = vld [vmem:[#allocation7 + $0x68] sm:$0xff]   ;;  %s1393_s12 = sshll.u32 %s1805_s24, 3  ;;  %v1852_v35 = vstv %s266_s8  ;;  %v1757_v55 = vmov 0.0  }
  0x20   : > { %v1634_v4 = vld [vmem:[#allocation7 + $0x38] sm:$0xff]   ;;  %1514 = vmatprep.subr.bf16.mxu1 %v1633_v3  ;;  %v1638_v8 = vld [vmem:[#allocation7 + $0x30] sm:$0xff]   ;;  %v1641_v11 = vld [vmem:[#allocation7 + $0xe8] sm:$0xff]   ;;  %s254_s13 = scalar_select %p253_p1, %s1805_s24, 0  ;;  %v282_v29 = vshrl.u32 %v281_v24, 7  ;;  %v283_v31 = vstv %s1393_s12  ;;  %vm278_vm0 = vcmp.lt.s32.totalorder %v1852_v35, 0 }
  0x21   : > { %s268_s10 = scalar_select %p1830_p0, 0, 255  ;;  %v1635_v5 = vld [vmem:[#allocation7 + $0xb8] sm:$0xff]   ;;  %1493 = vmatpush3.bf16.msra.mxu0 %v1634_v4  ;;  %v1639_v9 = vld [vmem:[#allocation7 + $0xb0] sm:$0xff]   ;;  %v1642_v12 = vld [vmem:[#allocation7 + $0x28] sm:$0xff]   ;;  %vm1758_vm2 = vmmov 0  }
  0x22   : > { %1515 = vmatpush3.bf16.msra.mxu1 %v1635_v5  ;;  %1494 = vmatprep.subr.bf16.mxu0 %v1636_v6  ;;  %v1643_v13 = vld [vmem:[#allocation7 + $0xa8] sm:$0xff]   ;;  %v1644_v14 = vld [vmem:[#allocation7 + $0x60] sm:$0xff]   ;;  %v1648_v18 = vld [vmem:[#allocation7 + $0x58] sm:$0xff]   ;;  %s1391_s15 = sshll.u32 %s254_s13, 3  ;;  %v1854_v36 = vadd.s32 %v283_v31, %v282_v29  ;;  %p262_p2 = scmp.lt.s32.totalorder %s1805_s24, 1 }
  0x23   : > { %1516 = vmatprep.subr.bf16.mxu1 %v1637_v7  ;;  %v1645_v15 = vld [vmem:[#allocation7 + $0xe0] sm:$0xff]   ;;  %v1649_v19 = vld [vmem:[#allocation7 + $0xd8] sm:$0xff]   ;;  %v1652_v22 = vld [vmem:[#allocation7 + $0x50] sm:$0xff]   ;;  %s269_s11 = sand.u32 3, %s268_s10  ;;  %s1846_s19 = scalar_lea.vmem %s1982_s4, %s1391_s15 }
  0x24   : > { %v1646_v16 = vld [vmem:[#allocation7 + $0x20] sm:$0xff]   ;;  %v1650_v20 = vld [vmem:[#allocation7 + $0x18] sm:$0xff]   ;;  %v1653_v23 = vld [vmem:[#allocation7 + $0xd0] sm:$0xff]   ;;  %s270_s14 = sshrl.u32 %s269_s11, 1  ;;  %vm285_vm1 = vcmp.lt.s32.totalorder %v1854_v36, 2  ;;  %s1988_s24 = smov (!%p262_p2, %s1805_s24), 1 }
  0x25   : > { %1495 = vmatpush3.bf16.msra.mxu0 %v1638_v8  ;;  %v1647_v17 = vld [vmem:[#allocation7 + $0xa0] sm:$0xff]   ;;  %v1651_v21 = vld [vmem:[#allocation7 + $0x98] sm:$0xff]   ;;  %v1654_v25 = vld [vmem:[#allocation7 + $0x10] sm:$0xff]   ;;  %s271_s16 = sor.u32 %s270_s14, %s269_s11  ;;  %s1392_s18 = sshll.u32 %s1988_s24, 3 }
  0x26   : > { %1517 = vmatpush3.bf16.msra.mxu1 %v1639_v9  ;;  %1496 = vmatprep.subr.bf16.mxu0 %v1640_v10  ;;  %v1655_v26 = vld [vmem:[#allocation7 + $0x90] sm:$0xff]   ;;  %v1656_v27 = vld [vmem:[#allocation7 + $0x48] sm:$0xff]   ;;  %v1660_v33 = vld [vmem:[#allocation7 + $0x40] sm:$0xff]   ;;  %s1848_s20 = sand.u32 1, %s271_s16  ;;  %s265_s21 = scalar_lea.vmem %s1984_s6, %s1392_s18 }
  0x27   : > { %1518 = vmatprep.subr.bf16.mxu1 %v1641_v11  ;;  %v1657_v28 = vld [vmem:[#allocation7 + $0xc8] sm:$0xff]   ;;  %v1661_v34 = vld [vmem:[#allocation7 + $0xc0] sm:$0xff]   ;;  %v1668_v47 = vld [vmem:[#allocation7 + $0x178] sm:$0xff]  }
  0x28   : > { %v1658_v30 = vld [vmem:[#allocation7 + $0x8] sm:$0xff]   ;;  %v1662_v37 = vld [vmem:[#allocation7] sm:$0xff]   ;;  %v1669_v50 = vld [vmem:[#allocation7 + $0x1f8] sm:$0xff]  }
  0x29   : > { %1497 = vmatpush3.bf16.msra.mxu0 %v1642_v12  ;;  %v1659_v32 = vld [vmem:[#allocation7 + $0x88] sm:$0xff]   ;;  %v1663_v38 = vld [vmem:[#allocation7 + $0x80] sm:$0xff]   ;;  %v1670_v62 = vld [vmem:[#allocation7 + $0x138] sm:$0xff]  }
  0x2a   : > { %1519 = vmatpush3.bf16.msra.mxu1 %v1643_v13  ;;  %1498 = vmatprep.subr.bf16.mxu0 %v1644_v14  ;;  %v273_v39 = vld [vmem:[%s1846_s19] sm:%s1848_s20]  ;;  %v1671_v0 = vld [vmem:[#allocation7 + $0x1b8] sm:$0xff]   ;;  %v1672_v5 = vld [vmem:[#allocation7 + $0x170] sm:$0xff]  }
  0x2b   : > { %1520 = vmatprep.subr.bf16.mxu1 %v1645_v15  ;;  %v1394_v40 = vld [vmem:[%s1846_s19 + $0x1] sm:%s1848_s20]  ;;  %v274_v41 = vunpack.c.l.bf16 %v273_v39  ;;  %v1673_v8 = vld [vmem:[#allocation7 + $0x1f0] sm:$0xff]  }
  0x2c   : > { %v300_v42 = vunpack.c.l.bf16 %v1394_v40  ;;  %v1396_v43 = vld [vmem:[%s1846_s19 + $0x2] sm:%s1848_s20]  ;;  %v1674_v9 = vld [vmem:[#allocation7 + $0x130] sm:$0xff]  }
  0x2d   : > { %1499 = vmatpush3.bf16.msra.mxu0 %v1646_v16  ;;  %v1398_v44 = vld [vmem:[%s1846_s19 + $0x3] sm:%s1848_s20]  ;;  %v327_v45 = vunpack.c.l.bf16 %v1396_v43  ;;  %v279_v48 = vsel %vm278_vm0, %v1797_v1, %v274_v41  ;;  %v1675_v10 = vld [vmem:[#allocation7 + $0x1b0] sm:$0xff]  }
  0x2e   : > { %1521 = vmatpush3.bf16.msra.mxu1 %v1647_v17  ;;  %1500 = vmatprep.subr.bf16.mxu0 %v1648_v18  ;;  %v354_v46 = vunpack.c.l.bf16 %v1398_v44  ;;  %v305_v49 = vsel %vm278_vm0, %v1797_v1, %v300_v42  ;;  %v286_v51 = vsel %vm285_vm1, %v279_v48, %v1797_v1  ;;  %v1676_v11 = vld [vmem:[#allocation7 + $0x168] sm:$0xff]   ;;  %v1680_v15 = vld [vmem:[#allocation7 + $0x160] sm:$0xff]  }
  0x2f   : > { %1522 = vmatprep.subr.bf16.mxu1 %v1649_v19  ;;  %v312_v52 = vsel %vm285_vm1, %v305_v49, %v1797_v1  ;;  %v332_v53 = vsel %vm278_vm0, %v1797_v1, %v327_v45  ;;  %v287_v56 = vpack.c.bf16 %v1757_v55, %v286_v51  ;;  %v1677_v12 = vld [vmem:[#allocation7 + $0x1e8] sm:$0xff]   ;;  %v1681_v16 = vld [vmem:[#allocation7 + $0x1e0] sm:$0xff]   ;;  %v1684_v19 = vld [vmem:[#allocation7 + $0x158] sm:$0xff]  }
  0x30   : > { %v359_v54 = vsel %vm278_vm0, %v1797_v1, %v354_v46  ;;  %v314_v57 = vpack.c.bf16 %v1757_v55, %v312_v52  ;;  %v339_v58 = vsel %vm285_vm1, %v332_v53, %v1797_v1  ;;  %v1678_v13 = vld [vmem:[#allocation7 + $0x128] sm:$0xff]   ;;  %v1682_v17 = vld [vmem:[#allocation7 + $0x120] sm:$0xff]  }
  0x31   : > { %1501 = vmatpush3.bf16.msra.mxu0 %v1650_v20  ;;  %v366_v59 = vsel %vm285_vm1, %v359_v54, %v1797_v1  ;;  %v341_v60 = vpack.c.bf16 %v1757_v55, %v339_v58  ;;  %290 = vst [vmem:[#allocation9] sm:$0xf] %v287_v56  ;;  %v1679_v14 = vld [vmem:[#allocation7 + $0x1a8] sm:$0xff]   ;;  %v1683_v18 = vld [vmem:[#allocation7 + $0x1a0] sm:$0xff]   ;;  %v1685_v20 = vld [vmem:[#allocation7 + $0x1d8] sm:$0xff]  }
  0x32   : > { %1523 = vmatpush3.bf16.msra.mxu1 %v1651_v21  ;;  %1502 = vmatprep.subr.bf16.mxu0 %v1652_v22  ;;  %v368_v61 = vpack.c.bf16 %v1757_v55, %v366_v59  ;;  %317 = vst [vmem:[#allocation9 + $0x4] sm:$0xf] %v314_v57  ;;  %v1686_v21 = vld [vmem:[#allocation7 + $0x118] sm:$0xff]   ;;  %v1400_v29 = vld [vmem:[%s1846_s19 + $0x4] sm:%s1848_s20] }
  0x33   : > { %1524 = vmatprep.subr.bf16.mxu1 %v1653_v23  ;;  %344 = vst [vmem:[#allocation9 + $0x8] sm:$0xf] %v341_v60  ;;  %v1687_v22 = vld [vmem:[#allocation7 + $0x198] sm:$0xff]   ;;  %v1688_v23 = vld [vmem:[#allocation7 + $0x150] sm:$0xff]   ;;  %v1693_v31 = vld [vmem:[#allocation7 + $0x1c8] sm:$0xff]  }
  0x34   : > { %371 = vst [vmem:[#allocation9 + $0xc] sm:$0xf] %v368_v61  ;;  %v1694_v40 = vld [vmem:[#allocation7 + $0x108] sm:$0xff]   ;;  %v1696_v44 = vld [vmem:[#allocation7 + $0x140] sm:$0xff]  }
  0x35   : > { %1503 = vmatpush3.bf16.msra.mxu0 %v1654_v25  ;;  %v1689_v25 = vld [vmem:[#allocation7 + $0x1d0] sm:$0xff]   ;;  %v1695_v43 = vld [vmem:[#allocation7 + $0x188] sm:$0xff]   ;;  %v1697_v54 = vld [vmem:[#allocation7 + $0x1c0] sm:$0xff]  }
  0x36   : > { %1525 = vmatpush3.bf16.msra.mxu1 %v1655_v26  ;;  %1504 = vmatprep.subr.bf16.mxu0 %v1656_v27  ;;  %v1690_v26 = vld [vmem:[#allocation7 + $0x110] sm:$0xff]   ;;  %v1698_v56 = vld [vmem:[#allocation7 + $0x100] sm:$0xff]  }
  0x37   : > { %1526 = vmatprep.subr.bf16.mxu1 %v1657_v28  ;;  %v1691_v27 = vld [vmem:[#allocation7 + $0x190] sm:$0xff]   ;;  %v1692_v28 = vld [vmem:[#allocation7 + $0x148] sm:$0xff]   ;;  %v1699_v57 = vld [vmem:[#allocation7 + $0x180] sm:$0xff]  }
  0x39   : > { %1505 = vmatpush3.bf16.msra.mxu0 %v1658_v30  ;;  %v481_v63 = vld [vmem:[#allocation9] sm:$0xff] }
  0x3a   : > { %1527 = vmatpush3.bf16.msra.mxu1 %v1659_v32  ;;  %1506 = vmatprep.subr.bf16.mxu0 %v1660_v33  ;;  %v1409_v2 = vcombine.low %v481_v63, %v481_v63  ;;  %v1410_v3 = vcombine.high %v481_v63, %v481_v63  ;;  %v1402_v30 = vld [vmem:[%s1846_s19 + $0x5] sm:%s1848_s20]  ;;  %v381_v32 = vunpack.c.l.bf16 %v1400_v29  ;;  %v1704_v63 = vld [vmem:[%s1980_s2 + $0x38] sm:$0xff]  }
  0x3b   : > { %1528 = vmatprep.subr.bf16.mxu1 %v1661_v34  ;;  %v482_v4 = vld [vmem:[#allocation9 + $0x8] sm:$0xff]  ;;  %v408_v33 = vunpack.c.l.bf16 %v1402_v30 }
  0x3c   : > { %v1411_v6 = vcombine.low %v482_v4, %v482_v4  ;;  %v1412_v7 = vcombine.high %v482_v4, %v482_v4  ;;  %1064 = vmatprep.mubr.bf16.mxu0 %v1410_v3  ;;  %v1404_v34 = vld [vmem:[%s1846_s19 + $0x6] sm:%s1848_s20]  ;;  %v386_v41 = vsel %vm278_vm0, %v1797_v1, %v381_v32  ;;  %v1708_v4 = vld [vmem:[%s1980_s2 + $0x18] sm:$0xff]  }
  0x3d   : > { %1507 = vmatpush3.bf16.msra.mxu0 %v1662_v37  ;;  %v1406_v37 = vld [vmem:[%s1846_s19 + $0x7] sm:%s1848_s20]  ;;  %v413_v42 = vsel %vm278_vm0, %v1797_v1, %v408_v33  ;;  %v393_v45 = vsel %vm285_vm1, %v386_v41, %v1797_v1 }
  0x3e   : > { %1529 = vmatpush3.bf16.msra.mxu1 %v1663_v38  ;;  %1536 = vmatprep.subr.bf16.mxu0 %v1668_v47  ;;  %v435_v38 = vunpack.c.l.bf16 %v1404_v34  ;;  %v462_v39 = vunpack.c.l.bf16 %v1406_v37  ;;  %v420_v46 = vsel %vm285_vm1, %v413_v42, %v1797_v1  ;;  %v395_v49 = vpack.c.bf16 %v1757_v55, %v393_v45  ;;  %v1707_v3 = vld [vmem:[%s1980_s2 + $0x20] sm:$0xff]  }
  0x3f   : > { %1558 = vmatprep.subr.bf16.mxu1 %v1669_v50  ;;  %1104 = vmatprep.mubr.bf16.mxu1 %v1412_v7  ;;  %v422_v50 = vpack.c.bf16 %v1757_v55, %v420_v46  ;;  %v1711_v7 = vld [vmem:[%s1980_s2] sm:$0xff]   ;;  %v1306_v37 = vand.u32 127, %v281_v24 }
  0x40   : > { %1065 = vmatmul.mubr.bf16.vlgmr.msra.gmra.mxu0 %v1409_v2  ;;  %v440_v47 = vsel %vm278_vm0, %v1797_v1, %v435_v38  ;;  %v467_v48 = vsel %vm278_vm0, %v1797_v1, %v462_v39  ;;  %398 = vst [vmem:[#allocation9 + $0x10] sm:$0xf] %v395_v49  ;;  %v1706_v2 = vld [vmem:[%s1980_s2 + $0x28] sm:$0xff]   ;;  %v1481_v38 = vld [vmem:[%s1981_s3] ss:$0 sm:$0xff] }
  0x41   : > { %1105 = vmatmul.mubr.bf16.vlgmr.msra.gmra.mxu1 %v1411_v6  ;;  %1537 = vmatpush3.bf16.msra.mxu0 %v1670_v62  ;;  %v447_v51 = vsel %vm285_vm1, %v440_v47, %v1797_v1  ;;  %v474_v52 = vsel %vm285_vm1, %v467_v48, %v1797_v1  ;;  %425 = vst [vmem:[#allocation9 + $0x14] sm:$0xf] %v422_v50  ;;  %v1710_v6 = vld [vmem:[%s1980_s2 + $0x8] sm:$0xff]   ;;  %vm1307_vm3 = vcmp.lt.s32.totalorder %v1306_v37, 10 }
  0x42   : > { %1559 = vmatpush3.bf16.msra.mxu1 %v1671_v0  ;;  %1538 = vmatprep.subr.bf16.mxu0 %v1672_v5  ;;  %v449_v53 = vpack.c.bf16 %v1757_v55, %v447_v51  ;;  %v476_v35 = vpack.c.bf16 %v1757_v55, %v474_v52  ;;  %v1705_v0 = vld [vmem:[%s1980_s2 + $0x30] sm:$0xff]  }
  0x43   : > { %1560 = vmatprep.subr.bf16.mxu1 %v1673_v8  ;;  %v1709_v5 = vld [vmem:[%s1980_s2 + $0x10] sm:$0xff]  }
  0x44   : > { %452 = vst [vmem:[#allocation9 + $0x18] sm:$0xf] %v449_v53  ;;  %479 = vst [vmem:[#allocation9 + $0x1c] sm:$0xf] %v476_v35 }
  0x45   : > { %1539 = vmatpush3.bf16.msra.mxu0 %v1674_v9 }
  0x46   : > { %1561 = vmatpush3.bf16.msra.mxu1 %v1675_v10  ;;  %1540 = vmatprep.subr.bf16.mxu0 %v1676_v11 }
  0x47   : > { %1562 = vmatprep.subr.bf16.mxu1 %v1677_v12 }
  0x48   : > { %v483_v36 = vld [vmem:[#allocation9 + $0x10] sm:$0xff] }
  0x49   : > { %1541 = vmatpush3.bf16.msra.mxu0 %v1678_v13  ;;  %v1413_v58 = vcombine.low %v483_v36, %v483_v36  ;;  %v1414_v59 = vcombine.high %v483_v36, %v483_v36 }
  0x4a   : > { %1563 = vmatpush3.bf16.msra.mxu1 %v1679_v14  ;;  %1542 = vmatprep.subr.bf16.mxu0 %v1680_v15 }
  0x4b   : > { %1564 = vmatprep.subr.bf16.mxu1 %v1681_v16  ;;  %v484_v60 = vld [vmem:[#allocation9 + $0x18] sm:$0xff]  ;;  %1144 = vmatprep.mubr.bf16.mxu0 %v1414_v59 }
  0x4c   : > { %v1415_v61 = vcombine.low %v484_v60, %v484_v60  ;;  %v1416_v62 = vcombine.high %v484_v60, %v484_v60 }
  0x4d   : > { %1543 = vmatpush3.bf16.msra.mxu0 %v1682_v17  ;;  %v1408_v17 = vld [vmem:[%s1979_s1] ss:$0 sm:$0xff] }
  0x4e   : > { %1565 = vmatpush3.bf16.msra.mxu1 %v1683_v18  ;;  %1544 = vmatprep.subr.bf16.mxu0 %v1684_v19 }
  0x4f   : > { %1566 = vmatprep.subr.bf16.mxu1 %v1685_v20  ;;  %1184 = vmatprep.mubr.bf16.mxu1 %v1416_v62 }
  0x51   : > { %1545 = vmatpush3.bf16.msra.mxu0 %v1686_v21 }
  0x52   : > { %1567 = vmatpush3.bf16.msra.mxu1 %v1687_v22  ;;  %1546 = vmatprep.subr.bf16.mxu0 %v1688_v23 }
  0x53   : > { %1568 = vmatprep.subr.bf16.mxu1 %v1689_v25 }
  0x55   : > { %1547 = vmatpush3.bf16.msra.mxu0 %v1690_v26 }
  0x56   : > { %1569 = vmatpush3.bf16.msra.mxu1 %v1691_v27  ;;  %1548 = vmatprep.subr.bf16.mxu0 %v1692_v28 }
  0x57   : > { %1570 = vmatprep.subr.bf16.mxu1 %v1693_v31 }
  0x59   : > { %1549 = vmatpush3.bf16.msra.mxu0 %v1694_v40 }
  0x5a   : > { %1571 = vmatpush3.bf16.msra.mxu1 %v1695_v43  ;;  %1550 = vmatprep.subr.bf16.mxu0 %v1696_v44 }
  0x5b   : > { %1572 = vmatprep.subr.bf16.mxu1 %v1697_v54 }
  0x5d   : > { %1551 = vmatpush3.bf16.msra.mxu0 %v1698_v56 }
  0x5e   : > { %1573 = vmatpush3.bf16.msra.mxu1 %v1699_v57  ;;  %1589 = vmatprep.subr.bf16.mxu0 %v1757_v55 }
  0x60   : > { %1145 = vmatmul.mubr.bf16.vlgmr.msra.gmra.mxu0 %v1413_v58 }
  0x61   : > { %1185 = vmatmul.mubr.bf16.vlgmr.msra.gmra.mxu1 %v1415_v61  ;;  %1590 = vmatpush3.bf16.msra.mxu0 %v1704_v63 }
  0x62   : > { %1591 = vmatprep.subr.bf16.mxu0 %v1757_v55  ;;  %1605 = vmatprep.mubr.msk.bf16.mxu0 %vm1758_vm2, %v1757_v55 }
  0x65   : > { %1592 = vmatpush3.bf16.msra.mxu0 %v1705_v0 }
  0x66   : > { %1593 = vmatprep.subr.bf16.mxu0 %v1757_v55 }
  0x69   : > { %1594 = vmatpush3.bf16.msra.mxu0 %v1706_v2 }
  0x6a   : > { %1595 = vmatprep.subr.bf16.mxu0 %v1757_v55 }
  0x6d   : > { %1596 = vmatpush3.bf16.msra.mxu0 %v1707_v3 }
  0x6e   : > { %1597 = vmatprep.subr.bf16.mxu0 %v1757_v55 }
  0x71   : > { %1598 = vmatpush3.bf16.msra.mxu0 %v1708_v4 }
  0x72   : > { %1599 = vmatprep.subr.bf16.mxu0 %v1757_v55 }
  0x75   : > { %1600 = vmatpush3.bf16.msra.mxu0 %v1709_v5 }
  0x76   : > { %1601 = vmatprep.subr.bf16.mxu0 %v1757_v55 }
  0x79   : > { %1602 = vmatpush3.bf16.msra.mxu0 %v1710_v6 }
  0x7a   : > { %1603 = vmatprep.subr.bf16.mxu0 %v1757_v55 }
  0x7d   : > { %1604 = vmatpush3.bf16.msra.mxu0 %v1711_v7 }
 0x100   : > { %v1508_v8 = vpop.f32.mrf.mxu0 }
 0x101   : > { %v1530_v9 = vpop.f32.mrf.mxu1 }
 0x102   : > { %v1509_v10 = vpop.f32.mrf.mxu0 }
 0x103   : > { %v1531_v11 = vpop.f32.mrf.mxu1  ;;  %v1510_v16 = vadd.f32 %v1509_v10, %v1508_v8 }
 0x104   : > { %v1511_v12 = vpop.f32.mrf.mxu0  ;;  %v1532_v19 = vadd.f32 %v1531_v11, %v1530_v9 }
 0x105   : > { %v1533_v13 = vpop.f32.mrf.mxu1  ;;  %v1067_v18 = vadd.f32 %v1510_v16, %v1408_v17 }
 0x106   : > { %v1512_v14 = vpop.f32.mrf.mxu0 }
 0x107   : > { %v1534_v15 = vpop.f32.mrf.mxu1  ;;  %v1107_v23 = vadd.f32 %v1532_v19, %v1067_v18 }
 0x120   : > { %v1552_v20 = vpop.f32.mrf.mxu0 }
 0x121   : > { %v1574_v21 = vpop.f32.mrf.mxu1 }
 0x122   : > { %v1553_v22 = vpop.f32.mrf.mxu0 }
 0x123   : > { %v1554_v55 = vadd.f32 %v1553_v22, %v1552_v20  ;;  %v1575_v25 = vpop.f32.mrf.mxu1 }
 0x124   : > { %v1555_v26 = vpop.f32.mrf.mxu0  ;;  %v1576_v28 = vadd.f32 %v1575_v25, %v1574_v21 }
 0x125   : > { %v1147_v27 = vadd.f32 %v1554_v55, %v1107_v23  ;;  %v1577_v29 = vpop.f32.mrf.mxu1 }
 0x126   : > { %v1556_v30 = vpop.f32.mrf.mxu0 }
 0x127   : > { %v1187_v31 = vadd.f32 %v1576_v28, %v1147_v27  ;;  %v1578_v32 = vpop.f32.mrf.mxu1 }
 0x129   : > { %v1192_v33 = vmax.f32 %v1187_v31, 0.0 }
 0x12b   : > { %v1193_v34 = vpack.c.bf16 %v1192_v33, %v1192_v33 }
 0x12d   : > { %1606 = vmatmul.mubr.bf16.vlgmr.msra.gmra.mxu0 %v1193_v34 }
 0x1ed   : > { %v1299_v39 = vpop.f32.mrf.mxu0 }
 0x1ee   : > { %v1300_v40 = vadd.f32 %v1481_v38, %v1299_v39 }
 0x1ef   : > { %v1607_v41 = vpop.f32.mrf.mxu0 }
 0x1f0   : > { %v1308_v42 = vsel %vm1307_vm3, %v1300_v40, -inf }
 0x1f1   : > { %1309 = vmax.xlane.f32.xlu0 %v1308_v42  ;;  %v1302_v43 = vpop.f32.mrf.mxu0 }
 0x1f3   : > { %v1608_v44 = vpop.f32.mrf.mxu0 }
 0x27a   : > { %v1310_v45 = vpop.xlane.xlu0 %1309 }
 0x27b   : > { %v1311_v46 = vsub.f32 %v1308_v42, %v1310_v45 }
 0x27d   : > { %v1312_v47 = vmul.f32 1.442695, %v1311_v46 }
 0x27f   : > { %1712 = vpow2.f32 %v1312_v47 }
 0x28c   : > { %v1713_v48 = vpop.eup %1712 }
 0x28d   : > { %1314 = vadd.xlane.f32.xlu0 %v1713_v48 }
 0x316   : > { %v1315_v24 = vpop.xlane.xlu0 %1314 }
 0x317   : > { %1714 = vrcp.f32 %v1315_v24 }
 0x324   : > { %v1715_v49 = vpop.eup %1714 }
 0x325   : > { %v1317_v50 = vmul.f32 %v1715_v49, %v1713_v48 }
 0x327   : > { %1318 = vst [vmem:[%s265_s21] sm:$0xff] %v1317_v50 }
 0x328 PF: > { %s22_s23 = sadd.s32 1, %s1752_s23  }
 0x329   : > { %p19_p3 = scmp.ge.s32.totalorder %s22_s23, 4  }
 0x32b   :  { %21 = sbr.rel (!%p19_p3) target bundleno = 4 (0x4), region = 89 }
 0x330   :  { %1338 = vsyncpa [#allocation8], 1 }
 0x331   :  { %1340 = vsyncpa [#allocation8 + $0x1], 1 }

</bundles_post_ra>
